<compile_context>
chip_gen: v6e
topology: v6e:2x2x1
jax: 0.10.0
libtpu: 0.0.40
codegen_flags: <defaults>
</compile_context>

<pallas_src>
import jax
import jax.numpy as jnp
from jax.experimental import pallas as pl
from jax.experimental.pallas import tpu as pltpu


def _round_up(x, m):
    return (x + m - 1) // m * m


def _critic_mlp_kernel(x_ref, w1_ref, b1_ref, w2_ref, b2_ref, w3_ref, b3_ref, o_ref):
    # x_ref: [state_dim, TB]   (batch on the lane axis -> lane-dense everywhere)
    # w1_ref: [h1, state_dim]  b1_ref: [h1, 1]
    # w2_ref: [h2, h1]         b2_ref: [h2, 1]
    # w3_ref: [h2, 1]          b3_ref: [1, 1]
    # o_ref:  [1, TB]
    x = x_ref[...]
    b1 = b1_ref[...]          # read biases once (hoisted; broadcast along lanes)
    b2 = b2_ref[...]

    h1 = jnp.dot(w1_ref[...], x, preferred_element_type=jnp.float32) + b1
    h1 = jnp.maximum(h1, 0.0)                                   # ReLU (VPU)

    h2 = jnp.dot(w2_ref[...], h1, preferred_element_type=jnp.float32) + b2
    h2 = jnp.maximum(h2, 0.0)                                   # ReLU (VPU)

    # Final Linear(h2 -> 1): elementwise multiply (VPU) + sublane reduce (XLU)
    # instead of a badly-shaped N=1 MXU matmul.  Result is a dense [1, TB] row.
    v = jnp.sum(w3_ref[...] * h2, axis=0, keepdims=True) + b3_ref[...]
    o_ref[...] = v


def critic_ppo_forward(state, params, *, block_b=512):
    """state: [B, state_dim] float32 -> value: [B, 1] float32."""
    w1, b1, w2, b2, w3, b3 = params
    B, state_dim = state.shape
    h1d = w1.shape[0]
    h2d = w2.shape[0]

    # Batch tile: multiple of 128 lanes; budgeted against v7x's 64 MiB VMEM
    # (at these feature sizes even TB=512 is only tens of KiB per buffer).
    TB = _round_up(min(block_b, B), 128)
    B_pad = _round_up(B, TB)
    grid = (B_pad // TB,)

    # Feature-major layout: batch on the lane axis (callers that already hold
    # rollouts feature-major can skip this transpose).
    x_t = jnp.transpose(state)                      # [state_dim, B]
    if B_pad != B:
        x_t = jnp.pad(x_t, ((0, 0), (0, B_pad - B)))

    flops = 2 * B_pad * (state_dim * h1d + h1d * h2d + h2d)
    bytes_accessed = 4 * (state_dim * B_pad + B_pad
                          + w1.size + b1.size + w2.size + b2.size
                          + w3.size + b3.size)

    out = pl.pallas_call(
        _critic_mlp_kernel,
        out_shape=jax.ShapeDtypeStruct((1, B_pad), jnp.float32),
        grid=grid,
        in_specs=[
            # streamed, batch-tiled activations
            pl.BlockSpec((state_dim, TB), lambda i: (0, i)),
            # weights / biases: constant index_map -> resident in VMEM
            pl.BlockSpec((h1d, state_dim), lambda i: (0, 0)),
            pl.BlockSpec((h1d, 1), lambda i: (0, 0)),
            pl.BlockSpec((h2d, h1d), lambda i: (0, 0)),
            pl.BlockSpec((h2d, 1), lambda i: (0, 0)),
            pl.BlockSpec((h2d, 1), lambda i: (0, 0)),
            pl.BlockSpec((1, 1), lambda i: (0, 0)),
        ],
        out_specs=pl.BlockSpec((1, TB), lambda i: (0, i)),
        compiler_params=pltpu.CompilerParams(
            dimension_semantics=("parallel",)),
        cost_estimate=pl.CostEstimate(
            flops=flops, transcendentals=0, bytes_accessed=bytes_accessed),
    )(x_t, w1, b1, w2, b2, w3, b3)

    # Drop batch padding and present the module's [B, 1] output.
    return out[0, :B].reshape(B, 1)


def init_critic_ppo_params(key, state_dim, mid_dim):
    """Deterministic synthetic init mirroring the PyTorch module's shapes.

    Weights are stored PyTorch-style as [out, in]; biases as [out, 1] columns
    (broadcast along the lane/batch axis inside the kernel).
    Hidden layers: default nn.Linear-style uniform init.
    Last layer: orthogonal_(weight, std=0.5) on a (1, h2) matrix == unit-norm
    row scaled by 0.5; bias = 1e-6.
    """
    h1d = mid_dim
    h2d = mid_dim // 2
    k1, k2, k3, k4, k5 = jax.random.split(key, 5)

    def linear_init(kw, kb, fan_in, fan_out):
        bound = fan_in ** -0.5
        w = jax.random.uniform(kw, (fan_out, fan_in), jnp.float32, -bound, bound)
        b = jax.random.uniform(kb, (fan_out, 1), jnp.float32, -bound, bound)
        return w, b

    w1, b1 = linear_init(k1, k2, state_dim, h1d)
    w2, b2 = linear_init(k3, k4, h1d, h2d)

    w3_row = jax.random.normal(k5, (h2d,), jnp.float32)
    w3_row = 0.5 * w3_row / jnp.linalg.norm(w3_row)
    w3 = w3_row.reshape(h2d, 1)                       # stored as column [h2, 1]
    b3 = jnp.full((1, 1), 1e-6, dtype=jnp.float32)    # constant_(bias, 1e-6)

    return (w1, b1, w2, b2, w3, b3)


def critic_ppo_reference(state, params):
    w1, b1, w2, b2, w3, b3 = params
    h1 = jnp.maximum(state @ w1.T + b1.T, 0.0)
    h2 = jnp.maximum(h1 @ w2.T + b2.T, 0.0)
    return h2 @ w3 + b3


if __name__ == "__main__":
    # Small shapes; B=200 is deliberately not a multiple of the tile so the
    # padding path is exercised, block_b=128 gives a 2-step grid.
    B, state_dim, mid_dim = 200, 16, 32

    key = jax.random.PRNGKey(0)
    k_state, k_params = jax.random.split(key)
    state = jax.random.normal(k_state, (B, state_dim), jnp.float32)
    params = init_critic_ppo_params(k_params, state_dim, mid_dim)

    out = critic_ppo_forward(state, params, block_b=128)
    out = jax.block_until_ready(out)

    ref = critic_ppo_reference(state, params)
    assert out.shape == (B, 1), out.shape
    assert jnp.allclose(out, ref, atol=1e-4, rtol=1e-4), "mismatch vs reference"

    print("KERNEL_OK")
</pallas_src>

<mosaic_0001>
module attributes {stable_mosaic.version = 11 : i64} {
  func.func @_critic_mlp_kernel(%arg0: i32, %arg1: memref<16x128xf32, #tpu.memory_space<vmem>>, %arg2: memref<32x16xf32, #tpu.memory_space<vmem>>, %arg3: memref<32x1xf32, #tpu.memory_space<vmem>>, %arg4: memref<16x32xf32, #tpu.memory_space<vmem>>, %arg5: memref<16x1xf32, #tpu.memory_space<vmem>>, %arg6: memref<16x1xf32, #tpu.memory_space<vmem>>, %arg7: memref<1x1xf32, #tpu.memory_space<vmem>>, %arg8: memref<1x128xf32, #tpu.memory_space<vmem>>) attributes {dimension_semantics = [#tpu.dimension_semantics<parallel>], iteration_bounds = array<i64: 2>, scalar_prefetch = 0 : i64, scratch_operands = 0 : i64, tpu.core_type = #tpu.core_type<tc>, window_params = [{transform_indices = @transform_0, window_bounds = array<i64: 16, 128>}, {pipeline_mode = #tpu.pipeline_mode<synchronous>, transform_indices = @transform_1, window_bounds = array<i64: 32, 16>}, {pipeline_mode = #tpu.pipeline_mode<synchronous>, transform_indices = @transform_2, window_bounds = array<i64: 32, 1>}, {pipeline_mode = #tpu.pipeline_mode<synchronous>, transform_indices = @transform_3, window_bounds = array<i64: 16, 32>}, {pipeline_mode = #tpu.pipeline_mode<synchronous>, transform_indices = @transform_4, window_bounds = array<i64: 16, 1>}, {pipeline_mode = #tpu.pipeline_mode<synchronous>, transform_indices = @transform_5, window_bounds = array<i64: 16, 1>}, {pipeline_mode = #tpu.pipeline_mode<synchronous>, transform_indices = @transform_6, window_bounds = array<i64: 1, 1>}, {transform_indices = @transform_7, window_bounds = array<i64: 1, 128>}]} {
    %c0 = arith.constant 0 : index
    %c0_0 = arith.constant 0 : index
    %0 = vector.load %arg1[%c0, %c0_0] : memref<16x128xf32, #tpu.memory_space<vmem>>, vector<16x128xf32>
    %c0_1 = arith.constant 0 : index
    %c0_2 = arith.constant 0 : index
    %1 = vector.load %arg3[%c0_1, %c0_2] : memref<32x1xf32, #tpu.memory_space<vmem>>, vector<32x1xf32>
    %c0_3 = arith.constant 0 : index
    %c0_4 = arith.constant 0 : index
    %2 = vector.load %arg5[%c0_3, %c0_4] : memref<16x1xf32, #tpu.memory_space<vmem>>, vector<16x1xf32>
    %c0_5 = arith.constant 0 : index
    %c0_6 = arith.constant 0 : index
    %3 = vector.load %arg2[%c0_5, %c0_6] : memref<32x16xf32, #tpu.memory_space<vmem>>, vector<32x16xf32>
    %cst = arith.constant dense<0.000000e+00> : vector<32x128xf32>
    %4 = tpu.matmul %3, %0, %cst {dimension_numbers = #tpu.dot_dimension_numbers<[1], [0], [0], [1], [0, 0, 1, 1], [], []>} : vector<32x16xf32>, vector<16x128xf32>, vector<32x128xf32> -> vector<32x128xf32>
    %5 = vector.broadcast %1 : vector<32x1xf32> to vector<32x128xf32>
    %6 = arith.addf %4, %5 : vector<32x128xf32>
    %cst_7 = arith.constant 0.000000e+00 : f32
    %7 = vector.broadcast %cst_7 : f32 to vector<32x128xf32>
    %8 = arith.maximumf %6, %7 : vector<32x128xf32>
    %c0_8 = arith.constant 0 : index
    %c0_9 = arith.constant 0 : index
    %9 = vector.load %arg4[%c0_8, %c0_9] : memref<16x32xf32, #tpu.memory_space<vmem>>, vector<16x32xf32>
    %cst_10 = arith.constant dense<0.000000e+00> : vector<16x128xf32>
    %10 = tpu.matmul %9, %8, %cst_10 {dimension_numbers = #tpu.dot_dimension_numbers<[1], [0], [0], [1], [0, 0, 1, 1], [], []>} : vector<16x32xf32>, vector<32x128xf32>, vector<16x128xf32> -> vector<16x128xf32>
    %11 = vector.broadcast %2 : vector<16x1xf32> to vector<16x128xf32>
    %12 = arith.addf %10, %11 : vector<16x128xf32>
    %cst_11 = arith.constant 0.000000e+00 : f32
    %13 = vector.broadcast %cst_11 : f32 to vector<16x128xf32>
    %14 = arith.maximumf %12, %13 : vector<16x128xf32>
    %c0_12 = arith.constant 0 : index
    %c0_13 = arith.constant 0 : index
    %15 = vector.load %arg6[%c0_12, %c0_13] : memref<16x1xf32, #tpu.memory_space<vmem>>, vector<16x1xf32>
    %16 = vector.broadcast %15 : vector<16x1xf32> to vector<16x128xf32>
    %17 = arith.mulf %16, %14 : vector<16x128xf32>
    %cst_14 = arith.constant dense<0.000000e+00> : vector<128xf32>
    %18 = vector.multi_reduction <add>, %17, %cst_14 [0] : vector<16x128xf32> to vector<128xf32>
    %19 = vector.shape_cast %18 : vector<128xf32> to vector<1x128xf32>
    %c0_15 = arith.constant 0 : index
    %c0_16 = arith.constant 0 : index
    %20 = vector.load %arg7[%c0_15, %c0_16] : memref<1x1xf32, #tpu.memory_space<vmem>>, vector<1x1xf32>
    %21 = vector.broadcast %20 : vector<1x1xf32> to vector<1x128xf32>
    %22 = arith.addf %19, %21 : vector<1x128xf32>
    %c0_17 = arith.constant 0 : index
    %c0_18 = arith.constant 0 : index
    %23 = vector.load %arg8[%c0_17, %c0_18] : memref<1x128xf32, #tpu.memory_space<vmem>>, vector<1x128xf32>
    tpu.vector_store %arg8[%c0_17, %c0_18], %22 {strides = array<i32>} : memref<1x128xf32, #tpu.memory_space<vmem>>, vector<1x128xf32>,
    return
  }
  func.func @transform_0(%arg0: i32) -> (i32, i32) {
    %c0_i32 = arith.constant 0 : i32
    %c0_i32_0 = arith.constant 0 : i32
    return %c0_i32, %arg0 : i32, i32
  }
  func.func @transform_1(%arg0: i32) -> (i32, i32) {
    %c0_i32 = arith.constant 0 : i32
    %c0_i32_0 = arith.constant 0 : i32
    %c0_i32_1 = arith.constant 0 : i32
    return %c0_i32, %c0_i32_0 : i32, i32
  }
  func.func @transform_2(%arg0: i32) -> (i32, i32) {
    %c0_i32 = arith.constant 0 : i32
    %c0_i32_0 = arith.constant 0 : i32
    %c0_i32_1 = arith.constant 0 : i32
    return %c0_i32, %c0_i32_0 : i32, i32
  }
  func.func @transform_3(%arg0: i32) -> (i32, i32) {
    %c0_i32 = arith.constant 0 : i32
    %c0_i32_0 = arith.constant 0 : i32
    %c0_i32_1 = arith.constant 0 : i32
    return %c0_i32, %c0_i32_0 : i32, i32
  }
  func.func @transform_4(%arg0: i32) -> (i32, i32) {
    %c0_i32 = arith.constant 0 : i32
    %c0_i32_0 = arith.constant 0 : i32
    %c0_i32_1 = arith.constant 0 : i32
    return %c0_i32, %c0_i32_0 : i32, i32
  }
  func.func @transform_5(%arg0: i32) -> (i32, i32) {
    %c0_i32 = arith.constant 0 : i32
    %c0_i32_0 = arith.constant 0 : i32
    %c0_i32_1 = arith.constant 0 : i32
    return %c0_i32, %c0_i32_0 : i32, i32
  }
  func.func @transform_6(%arg0: i32) -> (i32, i32) {
    %c0_i32 = arith.constant 0 : i32
    %c0_i32_0 = arith.constant 0 : i32
    %c0_i32_1 = arith.constant 0 : i32
    return %c0_i32, %c0_i32_0 : i32, i32
  }
  func.func @transform_7(%arg0: i32) -> (i32, i32) {
    %c0_i32 = arith.constant 0 : i32
    %c0_i32_0 = arith.constant 0 : i32
    return %c0_i32, %arg0 : i32, i32
  }
}

</mosaic_0001>

<bundles_post_ra>
// kernel: tpu_custom_call.1
= control target key start
LH: loop header
LB: loop body
LE: loop exit
PB: predicated region body
PF: predicated region fallthrough
CT: control target
= control target key end

     0   :  { %s997_s0 = inlined_call_operand.vmem [shape: f32[16,256], index: 0, kind: input, shape index: {}]   ;;  %s998_s1 = inlined_call_operand.vmem [shape: f32[32,16], index: 1, kind: input, shape index: {}]   ;;  %s999_s2 = inlined_call_operand.vmem [shape: f32[32,1], index: 2, kind: input, shape index: {}]   ;;  %s1000_s3 = inlined_call_operand.vmem [shape: f32[16,32], index: 3, kind: input, shape index: {}]   ;;  %s1001_s4 = inlined_call_operand.vmem [shape: f32[16,1], index: 4, kind: input, shape index: {}]   ;;  %s1002_s5 = inlined_call_operand.vmem [shape: f32[16,1], index: 5, kind: input, shape index: {}]   ;;  %s1003_s6 = inlined_call_operand.<no memory space> [shape: f32[1,1], index: 6, kind: input, shape index: {}]   ;;  %s1004_s7 = inlined_call_operand.hbm [shape: f32[1,256], index: 7, kind: output, shape index: {}]  }
   0x1   :  { %v12_v0 = vstv %s1003_s6 }
   0x2   :  { %13 = vst [vmem:[#allocation2] sm:$0x1] %v12_v0 }
   0x3   :  { %14 = vsyncpa [#allocation5], 0 }
   0x4   :  { %16 = vsyncpa [#allocation5 + $0x1], 0  ;;  %s852_s26 = smov 0   ;;  %s854_s27 = smov 0  }
   0x5   :  { %s856_s28 = smov 0   ;;  %s858_s29 = smov 0  }
   0x6 LB: > { %s653_s6 = sadd.s32 4294967295, %s805_s29   ;;  %s654_s30 = sadd.s32 4294967294, %s805_s29   ;;  %s805_s29 = sphi %s858_s29, %s1012_s29   ;;  %s801_s28 = sphi %s856_s28, %s1011_s28   ;;  %s797_s27 = sphi %s854_s27, %s1010_s27   ;;  %s793_s26 = sphi %s852_s26, %s1009_s26  }
   0x7   : > { %s875_s8 = sadd.s32 1, %s805_s29   ;;  %s29_s9 = sadd.s32 1, %s801_s28 }
   0x8   : > { %s26_s10 = ssub.s32 %s805_s29, %s875_s8  ;;  %p36_p0 = scmp.ne.s32.totalorder %s801_s28, %s797_s27 }
   0x9   : > { %p27_p1 = scmp.eq.s32.totalorder %s26_s10, 0  ;;  %p37_p2 = scmp.eq.s32.totalorder %s805_s29, 0 }
   0xa   : > { %p192_p3 = scmp.eq.s32.totalorder %s653_s6, 1  ;;  %p197_p4 = scmp.ne.s32.totalorder %s797_s27, %s793_s26 }
   0xb   : > { %s888_s11 = scalar_select %p27_p1, %s801_s28, %s29_s9  }
   0xc   : > { %p38_p5 = por %p37_p2, %p36_p0  ;;  %p890_p6 = por %p192_p3, %p36_p0 }
   0xd   : > { %p198_p7 = scmp.eq.s32.totalorder %s654_s30, 1  ;;  %p1005_p9 = scmp.ge.s32.totalorder %s805_s29, 2 }
   0xf   : > { %p894_p8 = por %p198_p7, %p197_p4  ;;  %232 = sbr.rel (%p1005_p9) target bundleno = 25 (0x19), region = 40 }
  0x14   : > { %235 = sbr.rel (!%p38_p5) target bundleno = 25 (0x19), region = 44  ;;  %s237_s14 = sand.u32 (%p38_p5), 1, %s801_s28  }
  0x15   : > { %s658_s15 = sshll.u32 (%p38_p5), %s805_s29, 3  ;;  %s657_s16 = sshll.u32 (%p38_p5), %s237_s14, 4 }
  0x16   : > { %s241_s19 = scalar_lea.vmem (%p38_p5), %s997_s0, %s658_s15  ;;  %s239_s20 = scalar_lea.vmem (%p38_p5), [#allocation3], %s657_s16 }
  0x17   : > { %v272_v1 = vld [vmem:[%s241_s19] sm:$0xff] (%p38_p5)  ;;  %v274_v2 = vld [vmem:[%s241_s19 + $0x10] sm:$0xff] (%p38_p5) }
  0x18   : > { %273 = vst [vmem:[%s239_s20] sm:$0xff] (%p38_p5), %v272_v1  ;;  %275 = vst [vmem:[%s239_s20 + $0x8] sm:$0xff] (%p38_p5), %v274_v2 }
  0x19 PF: > { %p659_p10 = scmp.ge.s32.totalorder %s805_s29, 1  ;;  %p280_p11 = scmp.lt.s32.totalorder %s805_s29, 3 }
  0x1b   : > { %p281_p12 = pnand %p659_p10, %p280_p11 }
  0x1c   : > { %s909_s21 = sand.u32 (!%p281_p12), 1, %s797_s27   ;;  %s808_s17 = smov (!%p281_p12), [#allocation4]  }
  0x1d   : > { %284 = sbr.rel (%p281_p12) target bundleno = 480 (0x1e0), region = 82  ;;  %s660_s24 = sshll.u32 (!%p281_p12), %s909_s21, 4 }
  0x1e   : > { %s289_s14 = scalar_lea.vmem (!%p281_p12), [#allocation3], %s660_s24  ;;  %s667_s24 = sshll.u32 (!%p281_p12), %s653_s6, 4 }
  0x1f   : > { %s316_s25 = scalar_lea.vmem (!%p281_p12), [#allocation4], %s909_s21  ;;  %s581_s15 = scalar_lea.sflag (!%p281_p12), [#allocation5], %s909_s21 }
  0x20   : > { %s593_s30 = sshll.u32 (!%p281_p12), %s316_s25, 4  ;;  %s749_s18 = sshll.u32 (!%p281_p12), %s808_s17, 4  ;;  %s594_s30 = int_to_ptr.vmem [resolvable:$true] %s593_s30  ;;  %s750_s18 = int_to_ptr.vmem [resolvable:$false] %s749_s18 }
  0x21   : > { %s745_s16 = scalar_lea.vmem (!%p281_p12), %s594_s30, 16  ;;  %s751_s6 = scalar_lea.vmem (!%p281_p12), %s750_s18, 32 }
  0x22   : > { %v325_v3 = vld [vmem:[%s998_s1] sm:$0xff]  ;;  %vm349_vm0 = vcmask 130048   ;;  %v807_v4 = vmov 0   ;;  %v322_v5 = vld [vmem:[%s999_s2 + $0x18] sm:$0xff]  ;;  %v320_v6 = vld [vmem:[%s999_s2 + $0x8] sm:$0xff]  ;;  %vm463_vm1 = vcmask 261120   ;;  %v574_v49 = vlaneseq  ;;  %p746_p13 = scmp.ne.s32.totalorder %s594_s30, %s745_s16  ;;  %p752_p2 = scmp.lt.s32.totalorder %s594_s30, %s750_s18 }
  0x23   : > { %686 = vmatprep.mubr.msk.f32.mxu0 %vm349_vm0, %v325_v3  ;;  %743 = vset.pattern.permute.xlu0 %v807_v4  ;;  %v318_v7 = vld [vmem:[%s289_s14 + $0x8] sm:$0xff]  ;;  %v317_v8 = vld [vmem:[%s289_s14] sm:$0xff]  ;;  %s591_s14 = scalar_lea.hbm %s1004_s7, %s667_s24  ;;  %p753_p3 = scmp.lt.s32.totalorder %s751_s6, %s745_s16 }
  0x24   : > { %346 = vperm.xlu0 %743, %v322_v5   ;;  %744 = vset.pattern.permute.xlu1 %v807_v4  ;;  %v321_v9 = vld [vmem:[%s999_s2 + $0x10] sm:$0xff]  ;;  %v319_v10 = vld [vmem:[%s999_s2] sm:$0xff]  ;;  %v326_v11 = vld [vmem:[%s998_s1 + $0x8] sm:$0xff]  ;;  %v575_v52 = vshrl.u32 %v574_v49, 7  ;;  %p747_p0 = pnand %p746_p13, %p890_p6 }
  0x25   : > { %336 = vperm.xlu1 %744, %v320_v6   ;;  %682 = vmatprep.subr.mxu0 %v318_v7  ;;  %v327_v12 = vld [vmem:[%s998_s1 + $0x10] sm:$0xff]  ;;  %v323_v13 = vld [vmem:[%s1001_s4] sm:$0xff]  ;;  %v324_v14 = vld [vmem:[%s1001_s4 + $0x8] sm:$0xff]  ;;  %p754_p4 = por %p753_p3, %p752_p2 }
  0x26   : > { %683 = vmatpush3.msra.mxu0 %v318_v7  ;;  %v328_v15 = vld [vmem:[%s998_s1 + $0x18] sm:$0xff]  ;;  %v547_v16 = vld [vmem:[%s1002_s5] sm:$0xff]  ;;  %v548_v17 = vld [vmem:[%s1002_s5 + $0x8] sm:$0xff]  ;;  %v576_v55 = vsub.s32 0, %v575_v52  ;;  %p748_p1 = pneg %p747_p0 }
  0x27   : > { %684 = vmatprep.subr.mxu0 %v317_v8  ;;  %v568_v18 = vld [vmem:[#allocation2] sm:$0x1]  ;;  %v452_v36 = vld [vmem:[%s1000_s3 + $0x8] sm:$0xff] }
  0x28   : > { %341 = vperm.xlu0 %743, %v321_v9   ;;  %685 = vmatpush3.msra.mxu0 %v317_v8  ;;  %v451_v19 = vld [vmem:[%s1000_s3] sm:$0xff]  ;;  %p755_p5 = pnand %p754_p4, %p748_p1 }
  0x29   : > { %331 = vperm.xlu1 %744, %v319_v10   ;;  %687 = vmatmul.mubr.msk.f32.vlgmr.msra.gmra.mxu0 %vm349_vm0, %v326_v11 }
  0x2a   : > { %689 = vmatprep.mubr.msk.f32.mxu0 %vm349_vm0, %v327_v12  ;;  %700 = vmatprep.mubr.msk.f32.mxu1 %vm463_vm1, %v451_v19 }
  0x2c   : > { %455 = vperm.xlu0 %743, %v323_v13  }
  0x2d   : > { %460 = vperm.xlu1 %744, %v324_v14   ;;  %690 = vmatmul.mubr.msk.f32.gmra.mxu0 %vm349_vm0, %v328_v15 }
  0x30   : > { %551 = vperm.xlu0 %743, %v547_v16  }
  0x31   : > { %556 = vperm.xlu1 %744, %v548_v17  }
  0x34   : > { %571 = vperm.xlu0 %743, %v568_v18  }
  0x9f   : > { %v347_v20 = vpop.permute.xlu0 %346 }
  0xa0   : > { %v337_v22 = vpop.permute.xlu1 %336 }
  0xa3   : > { %v342_v26 = vpop.permute.xlu0 %341 }
  0xa4   : > { %v332_v31 = vpop.permute.xlu1 %331 }
  0xa7   : > { %v456_v37 = vpop.permute.xlu0 %455 }
  0xa8   : > { %v461_v38 = vpop.permute.xlu1 %460 }
  0xab   : > { %v552_v45 = vpop.permute.xlu0 %551 }
  0xac   : > { %v557_v46 = vpop.permute.xlu1 %556 }
  0xaf   : > { %v572_v57 = vpop.permute.xlu0 %571 }
  0xb0   : > { %v577_v59 = vrot.slane %v572_v57, %v576_v55 }
  0xe9   : > { %v688_v21 = vpop.f32.mrf.mxu0 }
  0xea   : > { %v434_v28 = vadd.f32 %v688_v21, %v337_v22 }
  0xeb   : > { %v428_v23 = vpop.f32.mrf.mxu0 }
  0xec   : > { %v429_v32 = vadd.f32 %v428_v23, %v332_v31  ;;  %v448_v34 = vmax.f32 %v434_v28, 0.0 }
  0xed   : > { %v691_v24 = vpop.f32.mrf.mxu0 }
  0xee   : > { %v444_v25 = vadd.f32 %v691_v24, %v347_v20  ;;  %v447_v35 = vmax.f32 %v429_v32, 0.0 }
  0xef   : > { %v438_v27 = vpop.f32.mrf.mxu0 }
  0xf0   : > { %v450_v29 = vmax.f32 %v444_v25, 0.0  ;;  %v439_v30 = vadd.f32 %v438_v27, %v342_v26 }
  0xf2   : > { %v449_v33 = vmax.f32 %v439_v30, 0.0  ;;  %692 = vmatprep.subr.mxu1 %v450_v29 }
  0xf3   : > { %693 = vmatpush3.msra.mxu1 %v450_v29 }
  0xf4   : > { %694 = vmatprep.subr.mxu1 %v449_v33 }
  0xf5   : > { %695 = vmatpush3.msra.mxu1 %v449_v33 }
  0xf6   : > { %696 = vmatprep.subr.mxu1 %v448_v34 }
  0xf7   : > { %697 = vmatpush3.msra.mxu1 %v448_v34 }
  0xf8   : > { %698 = vmatprep.subr.mxu1 %v447_v35 }
  0xf9   : > { %699 = vmatpush3.msra.mxu1 %v447_v35 }
  0xfa   : > { %701 = vmatmul.mubr.msk.f32.vlgmr.msra.gmra.mxu1 %vm463_vm1, %v452_v36 }
 0x1ba   : > { %v702_v39 = vpop.f32.mrf.mxu1 }
 0x1bb   : > { %v542_v40 = vadd.f32 %v702_v39, %v461_v38 }
 0x1bc   : > { %v536_v41 = vpop.f32.mrf.mxu1 }
 0x1bd   : > { %v546_v42 = vmax.f32 %v542_v40, 0.0  ;;  %v537_v43 = vadd.f32 %v536_v41, %v456_v37 }
 0x1bf   : > { %v545_v44 = vmax.f32 %v537_v43, 0.0  ;;  %v560_v47 = vmul.f32 %v557_v46, %v546_v42 }
 0x1c1   : > { %v559_v48 = vmul.f32 %v552_v45, %v545_v44 }
 0x1c3   : > { %v561_v50 = vadd.f32 %v560_v47, %v559_v48 }
 0x1c5   : > { %v562_v51 = vrot.slane %v561_v50, 4 }
 0x1c7   : > { %v563_v53 = vadd.f32 %v562_v51, %v561_v50 }
 0x1c9   : > { %v564_v54 = vrot.slane %v563_v53, 2 }
 0x1cb   : > { %v565_v56 = vadd.f32 %v564_v54, %v563_v53 }
 0x1cd   : > { %v566_v58 = vrot.slane %v565_v56, 1 }
 0x1cf   : > { %v567_v60 = vadd.f32 %v566_v58, %v565_v56 }
 0x1d1   : > { %v578_v61 = vadd.f32 %v577_v59, %v567_v60 }
 0x1d3   : > { %579 = vst [vmem:[%s316_s25] sm:$0x1] %v578_v61 }
 0x1d4   : > { %758 = shalt.err (!%p755_p5)
}
 0x1d5   : > { %s759_s19 = scalar_lea.hbm %s591_s14, 16  ;;  %s763_s22 = scalar_lea.hbm %s1004_s7, 32 }
 0x1d6   : > { %p760_p7 = scmp.ne.s32.totalorder %s591_s14, %s759_s19  ;;  %p764_p12 = scmp.lt.s32.totalorder %s591_s14, %s1004_s7 }
 0x1d7   : > { %p765_p13 = scmp.lt.s32.totalorder %s763_s22, %s759_s19 }
 0x1d8   : > { %p761_p10 = pnand %p760_p7, %p890_p6 }
 0x1d9   : > { %p766_p0 = por %p765_p13, %p764_p12 }
 0x1da   : > { %p762_p11 = pneg %p761_p10 }
 0x1dc   : > { %p767_p9 = pnand %p766_p0, %p762_p11 }
 0x1de   : > { %770 = shalt.err (!%p767_p9)
}
 0x1df   : > { %703 = dma.vmem_to_hbm [thread:$0]  (%p890_p6), %s594_s30, 16, %s591_s14, %s581_s15  }
 0x1e0 PF: > { %s605_s25 = sand.u32 1, %s793_s26   ;;  %p1008_p1 = scmp.ge.s32.totalorder %s805_s29, 2 }
 0x1e1   : > { %s606_s9 = scalar_lea.sflag [#allocation5], %s605_s25 }
 0x1e2   : > { %p706_p2 = pnand %p1008_p1, %p894_p8 }
 0x1e4   : > { %p707_p3 = pneg %p706_p2 }
 0x1e6   : > { %788 = dma.done.wait (%p707_p3), %s606_s9, 16  }
 0x1e7   : > { %790 = vsyncadd (%p707_p3), %s606_s9, 4294967280  ;;  %p19_p9 = scmp.ge.s32.totalorder %s875_s8, 4   ;;  %s1009_s26 = smov %s797_s27 }
 0x1e8   : > { %s1010_s27 = smov %s801_s28  ;;  %s1011_s28 = smov %s888_s11 }
 0x1e9   : > { %s1012_s29 = smov %s875_s8  ;;  %21 = sbr.rel (!%p19_p9) target bundleno = 6 (0x6), region = 126 }
 0x1ee   :  { %610 = vsyncpa [#allocation5], 1 }
 0x1ef   :  { %612 = vsyncpa [#allocation5 + $0x1], 1 }

</bundles_post_ra>
